<compile_context>
chip_gen: v6e
topology: v6e:2x2x1
jax: 0.10.0
libtpu: 0.0.40
codegen_flags: <defaults>
</compile_context>

<pallas_src>
from functools import partial

import jax
import jax.numpy as jnp
from jax.experimental import pallas as pl
from jax.experimental.pallas import tpu as pltpu

LANE = 128


def _round_up(n, m=LANE):
    return ((n + m - 1) // m) * m


def _fused_backbone_fc_kernel(B, HW, patches_ref, wc_ref, bc_ref, wf_ref, bf_ref, o_ref):
    """Single fused kernel: im2col-conv + bias + ReLU + GAP + Linear head.

    patches_ref: (B*HW, Kp)   im2col patch matrix, K zero-padded to Kp (lane-dense)
    wc_ref:      (Kp, Dp)     conv weights (HWIO row-major), zero-padded
    bc_ref:      (1, Dp)      conv bias, zero-padded
    wf_ref:      (Dp, Np)     fc weights, zero-padded
    bf_ref:      (1, Np)      fc bias, zero-padded
    o_ref:       (B, Np)      lane-dense logits (wrapper slices [:, :N])
    """
    # Conv3x3 as one lane-dense im2col matmul on the MXU, f32 accumulate.
    acc = jnp.dot(patches_ref[...], wc_ref[...],
                  preferred_element_type=jnp.float32)              # (B*HW, Dp)
    acc = jnp.maximum(acc + bc_ref[...], 0.0)                      # bias + ReLU

    # Global average pool per batch element: sublane (XLU) reduction over HW.
    # The reshape only splits the leading dim (last dim unchanged -> layout preserving).
    feats = jnp.sum(acc.reshape(B, HW, acc.shape[-1]), axis=1) * (1.0 / HW)   # (B, Dp)

    # Fused fc head -> lane-dense (unmasked) store.
    o_ref[...] = (jnp.dot(feats, wf_ref[...], preferred_element_type=jnp.float32)
                  + bf_ref[...]).astype(o_ref.dtype)


def prepare_params(w_conv, b_conv, w_fc, b_fc):
    """One-time constant preprocessing (hoisted out of the per-call path)."""
    Kh, Kw, Cin, D = w_conv.shape
    K = Kh * Kw * Cin
    N = w_fc.shape[-1]
    Kp, Dp, Np = _round_up(K), _round_up(D), _round_up(N)

    wc = jnp.zeros((Kp, Dp), jnp.float32).at[:K, :D].set(
        w_conv.reshape(K, D).astype(jnp.float32))                 # HWIO row-major
    bc = jnp.zeros((1, Dp), jnp.float32).at[:, :D].set(
        b_conv.reshape(1, D).astype(jnp.float32))
    wf = jnp.zeros((Dp, Np), jnp.float32).at[:D, :N].set(w_fc.astype(jnp.float32))
    bf = jnp.zeros((1, Np), jnp.float32).at[:, :N].set(
        b_fc.reshape(1, N).astype(jnp.float32))
    return {"wc": wc, "bc": bc, "wf": wf, "bf": bf, "n_classes": N}


@partial(jax.jit, static_argnums=(5,))
def model_forward(x_nchw, wc, bc, wf, bf, n_classes):
    B, Cin, H, W = x_nchw.shape
    HW = H * W
    K = 9 * Cin
    Kp = wc.shape[0]
    Np = wf.shape[1]

    # im2col in XLA (tiny data, fuses into one fusion under jit):
    # NCHW -> NHWC, SAME zero pad, 9 shifted slices, column order (kh, kw, c).
    x = jnp.transpose(x_nchw, (0, 2, 3, 1)).astype(jnp.float32)
    xpad = jnp.pad(x, ((0, 0), (1, 1), (1, 1), (0, 0)))
    patches = jnp.concatenate(
        [xpad[:, kh:kh + H, kw:kw + W, :] for kh in range(3) for kw in range(3)],
        axis=-1,
    ).reshape(B * HW, K)
    patches = jnp.pad(patches, ((0, 0), (0, Kp - K)))              # lane-dense K

    out = pl.pallas_call(
        partial(_fused_backbone_fc_kernel, B, HW),
        out_shape=jax.ShapeDtypeStruct((B, Np), jnp.float32),
        in_specs=[pl.BlockSpec(memory_space=pltpu.MemorySpace.VMEM)] * 5,
        out_specs=pl.BlockSpec(memory_space=pltpu.MemorySpace.VMEM),
    )(patches, wc, bc, wf, bf)

    return out[:, :n_classes]


def _reference(x_nchw, w_conv, b_conv, w_fc, b_fc):
    x = jnp.transpose(x_nchw, (0, 2, 3, 1))
    y = jax.lax.conv_general_dilated(
        x, w_conv, window_strides=(1, 1), padding="SAME",
        dimension_numbers=("NHWC", "HWIO", "NHWC"))
    y = jnp.maximum(y + b_conv.reshape(1, 1, 1, -1), 0.0)
    f = jnp.mean(y, axis=(1, 2))
    return f @ w_fc + b_fc


if __name__ == "__main__":
    # Small shapes implied by the module: in_channels=4, head_hidden_size=32, n_classes=10
    B, Cin, H, W = 2, 4, 16, 16
    D, N = 32, 10

    key = jax.random.PRNGKey(0)
    k1, k2, k3, k4, k5 = jax.random.split(key, 5)
    w_conv = jax.random.normal(k1, (3, 3, Cin, D), jnp.float32) * 0.1
    b_conv = jax.random.normal(k2, (1, D), jnp.float32) * 0.01
    w_fc = jax.random.normal(k3, (D, N), jnp.float32) * 0.1   # stored as (in, out)
    b_fc = jax.random.normal(k4, (1, N), jnp.float32) * 0.01
    x = jax.random.normal(k5, (B, Cin, H, W), jnp.float32)

    params = prepare_params(w_conv, b_conv, w_fc, b_fc)
    out = jax.block_until_ready(
        model_forward(x, params["wc"], params["bc"], params["wf"], params["bf"],
                      params["n_classes"]))

    ref = _reference(x, w_conv, b_conv, w_fc, b_fc)
    assert out.shape == (B, N)
    assert jnp.allclose(out, ref, atol=1e-4, rtol=1e-4)

    print("KERNEL_OK")
</pallas_src>

<mosaic_0001>
module attributes {stable_mosaic.version = 11 : i64} {
  func.func @_fused_backbone_fc_kernel(%arg0: memref<512x128xf32, #tpu.memory_space<vmem>>, %arg1: memref<128x128xf32, #tpu.memory_space<vmem>>, %arg2: memref<1x128xf32, #tpu.memory_space<vmem>>, %arg3: memref<128x128xf32, #tpu.memory_space<vmem>>, %arg4: memref<1x128xf32, #tpu.memory_space<vmem>>, %arg5: memref<2x128xf32, #tpu.memory_space<vmem>>) attributes {dimension_semantics = [], scalar_prefetch = 0 : i64, scratch_operands = 0 : i64, tpu.core_type = #tpu.core_type<tc>} {
    %c0 = arith.constant 0 : index
    %c0_0 = arith.constant 0 : index
    %0 = vector.load %arg0[%c0, %c0_0] : memref<512x128xf32, #tpu.memory_space<vmem>>, vector<512x128xf32>
    %c0_1 = arith.constant 0 : index
    %c0_2 = arith.constant 0 : index
    %1 = vector.load %arg1[%c0_1, %c0_2] : memref<128x128xf32, #tpu.memory_space<vmem>>, vector<128x128xf32>
    %cst = arith.constant dense<0.000000e+00> : vector<512x128xf32>
    %2 = tpu.matmul %0, %1, %cst {dimension_numbers = #tpu.dot_dimension_numbers<[1], [0], [0], [1], [0, 0, 1, 1], [], []>} : vector<512x128xf32>, vector<128x128xf32>, vector<512x128xf32> -> vector<512x128xf32>
    %c0_3 = arith.constant 0 : index
    %c0_4 = arith.constant 0 : index
    %3 = vector.load %arg2[%c0_3, %c0_4] : memref<1x128xf32, #tpu.memory_space<vmem>>, vector<1x128xf32>
    %4 = vector.broadcast %3 : vector<1x128xf32> to vector<512x128xf32>
    %5 = arith.addf %2, %4 : vector<512x128xf32>
    %cst_5 = arith.constant 0.000000e+00 : f32
    %6 = vector.broadcast %cst_5 : f32 to vector<512x128xf32>
    %7 = arith.maximumf %5, %6 : vector<512x128xf32>
    %8 = vector.shape_cast %7 : vector<512x128xf32> to vector<2x256x128xf32>
    %cst_6 = arith.constant dense<0.000000e+00> : vector<2x128xf32>
    %9 = vector.multi_reduction <add>, %8, %cst_6 [1] : vector<2x256x128xf32> to vector<2x128xf32>
    %cst_7 = arith.constant 3.906250e-03 : f32
    %10 = vector.broadcast %cst_7 : f32 to vector<2x128xf32>
    %11 = arith.mulf %9, %10 : vector<2x128xf32>
    %c0_8 = arith.constant 0 : index
    %c0_9 = arith.constant 0 : index
    %12 = vector.load %arg3[%c0_8, %c0_9] : memref<128x128xf32, #tpu.memory_space<vmem>>, vector<128x128xf32>
    %cst_10 = arith.constant dense<0.000000e+00> : vector<2x128xf32>
    %13 = tpu.matmul %11, %12, %cst_10 {dimension_numbers = #tpu.dot_dimension_numbers<[1], [0], [0], [1], [0, 0, 1, 1], [], []>} : vector<2x128xf32>, vector<128x128xf32>, vector<2x128xf32> -> vector<2x128xf32>
    %c0_11 = arith.constant 0 : index
    %c0_12 = arith.constant 0 : index
    %14 = vector.load %arg4[%c0_11, %c0_12] : memref<1x128xf32, #tpu.memory_space<vmem>>, vector<1x128xf32>
    %15 = vector.broadcast %14 : vector<1x128xf32> to vector<2x128xf32>
    %16 = arith.addf %13, %15 : vector<2x128xf32>
    %c0_13 = arith.constant 0 : index
    %c0_14 = arith.constant 0 : index
    %17 = vector.load %arg5[%c0_13, %c0_14] : memref<2x128xf32, #tpu.memory_space<vmem>>, vector<2x128xf32>
    tpu.vector_store %arg5[%c0_13, %c0_14], %16 {strides = array<i32>} : memref<2x128xf32, #tpu.memory_space<vmem>>, vector<2x128xf32>,
    return
  }
}

</mosaic_0001>

<bundles_post_ra>
// kernel: model_forward.1
= control target key start
LH: loop header
LB: loop body
LE: loop exit
PB: predicated region body
PF: predicated region fallthrough
CT: control target
= control target key end

     0   :  { %s1527_s0 = inlined_call_operand.vmem [shape: f32[512,128], index: 0, kind: input, shape index: {}]   ;;  %s1528_s1 = inlined_call_operand.vmem [shape: f32[128,128], index: 1, kind: input, shape index: {}]   ;;  %s1529_s2 = inlined_call_operand.vmem [shape: f32[1,128], index: 2, kind: input, shape index: {}]   ;;  %s1530_s3 = inlined_call_operand.vmem [shape: f32[128,128], index: 3, kind: input, shape index: {}]   ;;  %s1531_s4 = inlined_call_operand.vmem [shape: f32[1,128], index: 4, kind: input, shape index: {}]   ;;  %s1532_s5 = inlined_call_operand.hbm [shape: f32[2,128], index: 5, kind: output, shape index: {}]  }
   0x1   :  { %v100_v0 = vld [vmem:[%s1528_s1 + $0x78] sm:$0xff]  ;;  %v99_v1 = vld [vmem:[%s1528_s1 + $0x70] sm:$0xff]  ;;  %v98_v2 = vld [vmem:[%s1528_s1 + $0x68] sm:$0xff] }
   0x2   :  { %845 = vmatprep.subr.mxu0 %v100_v0  ;;  %1008 = vmatprep.subr.mxu1 %v100_v0  ;;  %v97_v3 = vld [vmem:[%s1528_s1 + $0x60] sm:$0xff]  ;;  %v96_v5 = vld [vmem:[%s1528_s1 + $0x58] sm:$0xff]  ;;  %v95_v6 = vld [vmem:[%s1528_s1 + $0x50] sm:$0xff] }
   0x3   :  { %846 = vmatpush3.msra.mxu0 %v100_v0  ;;  %1024 = vmatpush3.msra.mxu1 %v100_v0  ;;  %v21_v4 = vld [vmem:[%s1527_s0] sm:$0xff]  ;;  %v94_v7 = vld [vmem:[%s1528_s1 + $0x48] sm:$0xff]  ;;  %v92_v9 = vld [vmem:[%s1528_s1 + $0x38] sm:$0xff] }
   0x4   :  { %847 = vmatprep.subr.mxu0 %v99_v1  ;;  %1009 = vmatprep.subr.mxu1 %v99_v1  ;;  %v93_v8 = vld [vmem:[%s1528_s1 + $0x40] sm:$0xff]  ;;  %v91_v10 = vld [vmem:[%s1528_s1 + $0x30] sm:$0xff]  ;;  %v90_v11 = vld [vmem:[%s1528_s1 + $0x28] sm:$0xff] }
   0x5   :  { %848 = vmatpush3.msra.mxu0 %v99_v1  ;;  %1025 = vmatpush3.msra.mxu1 %v99_v1  ;;  %v89_v12 = vld [vmem:[%s1528_s1 + $0x20] sm:$0xff]  ;;  %v88_v13 = vld [vmem:[%s1528_s1 + $0x18] sm:$0xff]  ;;  %v87_v14 = vld [vmem:[%s1528_s1 + $0x10] sm:$0xff] }
   0x6   :  { %849 = vmatprep.subr.mxu0 %v98_v2  ;;  %1010 = vmatprep.subr.mxu1 %v98_v2  ;;  %v86_v15 = vld [vmem:[%s1528_s1 + $0x8] sm:$0xff] }
   0x7   :  { %850 = vmatpush3.msra.mxu0 %v98_v2  ;;  %877 = vmatprep.mubr.f32.mxu0 %v21_v4 }
   0x8   :  { %851 = vmatprep.subr.mxu0 %v97_v3  ;;  %1026 = vmatpush3.msra.mxu1 %v98_v2 }
   0x9   :  { %852 = vmatpush3.msra.mxu0 %v97_v3  ;;  %1011 = vmatprep.subr.mxu1 %v97_v3 }
   0xa   :  { %853 = vmatprep.subr.mxu0 %v96_v5  ;;  %1027 = vmatpush3.msra.mxu1 %v97_v3 }
   0xb   :  { %854 = vmatpush3.msra.mxu0 %v96_v5  ;;  %1012 = vmatprep.subr.mxu1 %v96_v5 }
   0xc   :  { %855 = vmatprep.subr.mxu0 %v95_v6  ;;  %1028 = vmatpush3.msra.mxu1 %v96_v5 }
   0xd   :  { %856 = vmatpush3.msra.mxu0 %v95_v6  ;;  %1013 = vmatprep.subr.mxu1 %v95_v6 }
   0xe   :  { %857 = vmatprep.subr.mxu0 %v94_v7  ;;  %1029 = vmatpush3.msra.mxu1 %v95_v6 }
   0xf   :  { %858 = vmatpush3.msra.mxu0 %v94_v7  ;;  %1014 = vmatprep.subr.mxu1 %v94_v7 }
  0x10   :  { %859 = vmatprep.subr.mxu0 %v93_v8  ;;  %1030 = vmatpush3.msra.mxu1 %v94_v7 }
  0x11   :  { %860 = vmatpush3.msra.mxu0 %v93_v8  ;;  %1015 = vmatprep.subr.mxu1 %v93_v8 }
  0x12   :  { %861 = vmatprep.subr.mxu0 %v92_v9  ;;  %1031 = vmatpush3.msra.mxu1 %v93_v8 }
  0x13   :  { %862 = vmatpush3.msra.mxu0 %v92_v9  ;;  %1016 = vmatprep.subr.mxu1 %v92_v9 }
  0x14   :  { %863 = vmatprep.subr.mxu0 %v91_v10  ;;  %1032 = vmatpush3.msra.mxu1 %v92_v9 }
  0x15   :  { %864 = vmatpush3.msra.mxu0 %v91_v10  ;;  %1017 = vmatprep.subr.mxu1 %v91_v10 }
  0x16   :  { %865 = vmatprep.subr.mxu0 %v90_v11  ;;  %1033 = vmatpush3.msra.mxu1 %v91_v10 }
  0x17   :  { %866 = vmatpush3.msra.mxu0 %v90_v11  ;;  %1018 = vmatprep.subr.mxu1 %v90_v11 }
  0x18   :  { %867 = vmatprep.subr.mxu0 %v89_v12  ;;  %1034 = vmatpush3.msra.mxu1 %v90_v11 }
  0x19   :  { %868 = vmatpush3.msra.mxu0 %v89_v12  ;;  %1019 = vmatprep.subr.mxu1 %v89_v12 }
  0x1a   :  { %869 = vmatprep.subr.mxu0 %v88_v13  ;;  %1035 = vmatpush3.msra.mxu1 %v89_v12 }
  0x1b   :  { %870 = vmatpush3.msra.mxu0 %v88_v13  ;;  %1020 = vmatprep.subr.mxu1 %v88_v13 }
  0x1c   :  { %10 = vsyncpa [#allocation3], 0  ;;  %871 = vmatprep.subr.mxu0 %v87_v14  ;;  %1036 = vmatpush3.msra.mxu1 %v88_v13  ;;  %v85_v16 = vld [vmem:[%s1528_s1] sm:$0xff]  ;;  %v22_v17 = vld [vmem:[%s1527_s0 + $0x8] sm:$0xff]  ;;  %vm1066_vm0 = vmmov 0   ;;  %vm658_vm1 = vcmask 1041409  }
  0x1d   :  { %872 = vmatpush3.msra.mxu0 %v87_v14  ;;  %1021 = vmatprep.subr.mxu1 %v87_v14  ;;  %v23_v18 = vld [vmem:[%s1527_s0 + $0x10] sm:$0xff]  ;;  %v56_v20 = vld [vmem:[%s1527_s0 + $0x118] sm:$0xff]  ;;  %v57_v21 = vld [vmem:[%s1527_s0 + $0x120] sm:$0xff]  ;;  %s1067_s29 = smov [#allocation2]  }
  0x1e   :  { %873 = vmatprep.subr.mxu0 %v86_v15  ;;  %1037 = vmatpush3.msra.mxu1 %v87_v14  ;;  %v55_v19 = vld [vmem:[%s1527_s0 + $0x110] sm:$0xff]  ;;  %v24_v22 = vld [vmem:[%s1527_s0 + $0x18] sm:$0xff]  ;;  %v25_v23 = vld [vmem:[%s1527_s0 + $0x20] sm:$0xff]  ;;  %s738_s30 = sshll.u32 %s1067_s29, 4  ;;  %s739_s30 = int_to_ptr.vmem [resolvable:$true] %s738_s30 }
  0x1f   :  { %874 = vmatpush3.msra.mxu0 %v86_v15  ;;  %1022 = vmatprep.subr.mxu1 %v86_v15  ;;  %v58_v24 = vld [vmem:[%s1527_s0 + $0x128] sm:$0xff]  ;;  %v59_v25 = vld [vmem:[%s1527_s0 + $0x130] sm:$0xff]  ;;  %v60_v28 = vld [vmem:[%s1527_s0 + $0x138] sm:$0xff]  ;;  %s1043_s6 = scalar_lea.vmem %s739_s30, 32  ;;  %p1048_p1 = scmp.lt.s32.totalorder %s739_s30, %s739_s30 }
  0x20   :  { %875 = vmatprep.subr.mxu0 %v85_v16  ;;  %1038 = vmatpush3.msra.mxu1 %v86_v15  ;;  %v26_v26 = vld [vmem:[%s1527_s0 + $0x28] sm:$0xff]  ;;  %v27_v27 = vld [vmem:[%s1527_s0 + $0x30] sm:$0xff]  ;;  %v61_v29 = vld [vmem:[%s1527_s0 + $0x140] sm:$0xff]  ;;  %p1044_p0 = scmp.ne.s32.totalorder %s739_s30, %s1043_s6  ;;  %p1049_p2 = scmp.lt.s32.totalorder %s1043_s6, %s1043_s6 }
  0x21   :  { %876 = vmatpush3.msra.mxu0 %v85_v16  ;;  %1023 = vmatprep.subr.mxu1 %v85_v16  ;;  %v28_v30 = vld [vmem:[%s1527_s0 + $0x38] sm:$0xff]  ;;  %v29_v31 = vld [vmem:[%s1527_s0 + $0x40] sm:$0xff]  ;;  %v62_v32 = vld [vmem:[%s1527_s0 + $0x148] sm:$0xff] }
  0x22   :  { %878 = vmatmul.mubr.f32.vlgmr.msra.gmra.mxu0 %v22_v17  ;;  %1039 = vmatpush3.msra.mxu1 %v85_v16  ;;  %v63_v33 = vld [vmem:[%s1527_s0 + $0x150] sm:$0xff]  ;;  %v30_v34 = vld [vmem:[%s1527_s0 + $0x48] sm:$0xff]  ;;  %v64_v36 = vld [vmem:[%s1527_s0 + $0x158] sm:$0xff]  ;;  %v1065_v17 = vmov 0.0   ;;  %p1050_p3 = por %p1049_p2, %p1048_p1 }
  0x23   :  { %880 = vmatprep.mubr.f32.mxu0 %v23_v18  ;;  %928 = vmatprep.mubr.f32.mxu1 %v55_v19  ;;  %v31_v35 = vld [vmem:[%s1527_s0 + $0x50] sm:$0xff]  ;;  %v65_v37 = vld [vmem:[%s1527_s0 + $0x160] sm:$0xff]  ;;  %v32_v38 = vld [vmem:[%s1527_s0 + $0x58] sm:$0xff] }
  0x24   :  { %929 = vmatmul.mubr.f32.vlgmr.msra.gmra.mxu1 %v56_v20  ;;  %v33_v39 = vld [vmem:[%s1527_s0 + $0x60] sm:$0xff]  ;;  %v66_v40 = vld [vmem:[%s1527_s0 + $0x168] sm:$0xff]  ;;  %v67_v41 = vld [vmem:[%s1527_s0 + $0x170] sm:$0xff]  ;;  %973 = vmatprep.subr.mxu1 %v1065_v17  ;;  %p1051_p4 = pnand %p1050_p3, %p1044_p0 }
  0x25   :  { %931 = vmatprep.mubr.f32.mxu1 %v57_v21  ;;  %v34_v42 = vld [vmem:[%s1527_s0 + $0x68] sm:$0xff]  ;;  %v35_v43 = vld [vmem:[%s1527_s0 + $0x70] sm:$0xff]  ;;  %v68_v44 = vld [vmem:[%s1527_s0 + $0x178] sm:$0xff] }
  0x26   :  { %881 = vmatmul.mubr.f32.gmra.mxu0 %v24_v22  ;;  %v69_v45 = vld [vmem:[%s1527_s0 + $0x180] sm:$0xff]  ;;  %v36_v46 = vld [vmem:[%s1527_s0 + $0x78] sm:$0xff]  ;;  %v70_v48 = vld [vmem:[%s1527_s0 + $0x188] sm:$0xff] }
  0x27   :  { %883 = vmatprep.mubr.f32.mxu0 %v25_v23  ;;  %v37_v47 = vld [vmem:[%s1527_s0 + $0x80] sm:$0xff]  ;;  %v71_v49 = vld [vmem:[%s1527_s0 + $0x190] sm:$0xff]  ;;  %v38_v50 = vld [vmem:[%s1527_s0 + $0x88] sm:$0xff] }
  0x28   :  { %932 = vmatmul.mubr.f32.gmra.mxu1 %v58_v24  ;;  %v39_v51 = vld [vmem:[%s1527_s0 + $0x90] sm:$0xff]  ;;  %v72_v52 = vld [vmem:[%s1527_s0 + $0x198] sm:$0xff]  ;;  %v73_v53 = vld [vmem:[%s1527_s0 + $0x1a0] sm:$0xff] }
  0x29   :  { %934 = vmatprep.mubr.f32.mxu1 %v59_v25  ;;  %v40_v54 = vld [vmem:[%s1527_s0 + $0x98] sm:$0xff]  ;;  %v41_v55 = vld [vmem:[%s1527_s0 + $0xa0] sm:$0xff]  ;;  %v74_v56 = vld [vmem:[%s1527_s0 + $0x1a8] sm:$0xff] }
  0x2a   :  { %884 = vmatmul.mubr.f32.gmra.mxu0 %v26_v26  ;;  %v75_v57 = vld [vmem:[%s1527_s0 + $0x1b0] sm:$0xff]  ;;  %v42_v58 = vld [vmem:[%s1527_s0 + $0xa8] sm:$0xff]  ;;  %v76_v60 = vld [vmem:[%s1527_s0 + $0x1b8] sm:$0xff] }
  0x2b   :  { %886 = vmatprep.mubr.f32.mxu0 %v27_v27  ;;  %v43_v59 = vld [vmem:[%s1527_s0 + $0xb0] sm:$0xff]  ;;  %v77_v61 = vld [vmem:[%s1527_s0 + $0x1c0] sm:$0xff]  ;;  %v44_v62 = vld [vmem:[%s1527_s0 + $0xb8] sm:$0xff] }
  0x2c   :  { %935 = vmatmul.mubr.f32.gmra.mxu1 %v60_v28  ;;  %v45_v63 = vld [vmem:[%s1527_s0 + $0xc0] sm:$0xff]  ;;  %v78_v0 = vld [vmem:[%s1527_s0 + $0x1c8] sm:$0xff]  ;;  %v79_v1 = vld [vmem:[%s1527_s0 + $0x1d0] sm:$0xff] }
  0x2d   :  { %937 = vmatprep.mubr.f32.mxu1 %v61_v29  ;;  %v46_v2 = vld [vmem:[%s1527_s0 + $0xc8] sm:$0xff]  ;;  %v47_v3 = vld [vmem:[%s1527_s0 + $0xd0] sm:$0xff]  ;;  %v80_v4 = vld [vmem:[%s1527_s0 + $0x1d8] sm:$0xff] }
  0x2e   :  { %887 = vmatmul.mubr.f32.gmra.mxu0 %v28_v30  ;;  %v81_v5 = vld [vmem:[%s1527_s0 + $0x1e0] sm:$0xff]  ;;  %v48_v6 = vld [vmem:[%s1527_s0 + $0xd8] sm:$0xff]  ;;  %v82_v8 = vld [vmem:[%s1527_s0 + $0x1e8] sm:$0xff] }
  0x2f   :  { %889 = vmatprep.mubr.f32.mxu0 %v29_v31  ;;  %v49_v7 = vld [vmem:[%s1527_s0 + $0xe0] sm:$0xff]  ;;  %v83_v9 = vld [vmem:[%s1527_s0 + $0x1f0] sm:$0xff]  ;;  %v50_v10 = vld [vmem:[%s1527_s0 + $0xe8] sm:$0xff] }
  0x30   :  { %938 = vmatmul.mubr.f32.gmra.mxu1 %v62_v32  ;;  %v51_v11 = vld [vmem:[%s1527_s0 + $0xf0] sm:$0xff]  ;;  %v84_v12 = vld [vmem:[%s1527_s0 + $0x1f8] sm:$0xff]  ;;  %v53_v14 = vld [vmem:[%s1527_s0 + $0x100] sm:$0xff] }
  0x31   :  { %940 = vmatprep.mubr.f32.mxu1 %v63_v33  ;;  %v52_v13 = vld [vmem:[%s1527_s0 + $0xf8] sm:$0xff]  ;;  %v54_v15 = vld [vmem:[%s1527_s0 + $0x108] sm:$0xff]  ;;  %v647_v18 = vld [vmem:[%s1530_s3 + $0x70] sm:$0xff] }
  0x32   :  { %890 = vmatmul.mubr.f32.gmra.mxu0 %v30_v34  ;;  %v648_v16 = vld [vmem:[%s1530_s3 + $0x78] sm:$0xff]  ;;  %v646_v19 = vld [vmem:[%s1530_s3 + $0x68] sm:$0xff]  ;;  %v645_v20 = vld [vmem:[%s1530_s3 + $0x60] sm:$0xff] }
  0x33   :  { %892 = vmatprep.mubr.f32.mxu0 %v31_v35  ;;  %974 = vmatpush3.msra.mxu1 %v648_v16  ;;  %v644_v21 = vld [vmem:[%s1530_s3 + $0x58] sm:$0xff]  ;;  %v643_v22 = vld [vmem:[%s1530_s3 + $0x50] sm:$0xff]  ;;  %v642_v23 = vld [vmem:[%s1530_s3 + $0x48] sm:$0xff] }
  0x34   :  { %941 = vmatmul.mubr.f32.gmra.mxu1 %v64_v36  ;;  %975 = vmatprep.subr.mxu1 %v1065_v17  ;;  %v641_v24 = vld [vmem:[%s1530_s3 + $0x40] sm:$0xff]  ;;  %v640_v25 = vld [vmem:[%s1530_s3 + $0x38] sm:$0xff]  ;;  %v639_v36 = vld [vmem:[%s1530_s3 + $0x30] sm:$0xff] }
  0x35   :  { %943 = vmatprep.mubr.f32.mxu1 %v65_v37  ;;  %976 = vmatpush3.msra.mxu1 %v647_v18  ;;  %v1377_v26 = vld [vmem:[%s1529_s2] ss:$0 sm:$0xff] }
  0x36   :  { %893 = vmatmul.mubr.f32.gmra.mxu0 %v32_v38  ;;  %977 = vmatprep.subr.mxu1 %v1065_v17 }
  0x37   :  { %895 = vmatprep.mubr.f32.mxu0 %v33_v39  ;;  %978 = vmatpush3.msra.mxu1 %v646_v19 }
  0x38   :  { %944 = vmatmul.mubr.f32.gmra.mxu1 %v66_v40  ;;  %979 = vmatprep.subr.mxu1 %v1065_v17 }
  0x39   :  { %946 = vmatprep.mubr.f32.mxu1 %v67_v41  ;;  %980 = vmatpush3.msra.mxu1 %v645_v20 }
  0x3a   :  { %896 = vmatmul.mubr.f32.gmra.mxu0 %v34_v42  ;;  %981 = vmatprep.subr.mxu1 %v1065_v17  ;;  %v638_v42 = vld [vmem:[%s1530_s3 + $0x28] sm:$0xff] }
  0x3b   :  { %898 = vmatprep.mubr.f32.mxu0 %v35_v43  ;;  %982 = vmatpush3.msra.mxu1 %v644_v21 }
  0x3c   :  { %947 = vmatmul.mubr.f32.gmra.mxu1 %v68_v44  ;;  %983 = vmatprep.subr.mxu1 %v1065_v17 }
  0x3d   :  { %949 = vmatprep.mubr.f32.mxu1 %v69_v45  ;;  %984 = vmatpush3.msra.mxu1 %v643_v22  ;;  %v637_v45 = vld [vmem:[%s1530_s3 + $0x20] sm:$0xff] }
  0x3e   :  { %899 = vmatmul.mubr.f32.gmra.mxu0 %v36_v46  ;;  %985 = vmatprep.subr.mxu1 %v1065_v17 }
  0x3f   :  { %901 = vmatprep.mubr.f32.mxu0 %v37_v47  ;;  %986 = vmatpush3.msra.mxu1 %v642_v23 }
  0x40   :  { %950 = vmatmul.mubr.f32.gmra.mxu1 %v70_v48  ;;  %987 = vmatprep.subr.mxu1 %v1065_v17 }
  0x41   :  { %952 = vmatprep.mubr.f32.mxu1 %v71_v49  ;;  %988 = vmatpush3.msra.mxu1 %v641_v24 }
  0x42   :  { %902 = vmatmul.mubr.f32.gmra.mxu0 %v38_v50  ;;  %989 = vmatprep.subr.mxu1 %v1065_v17 }
  0x43   :  { %904 = vmatprep.mubr.f32.mxu0 %v39_v51  ;;  %990 = vmatpush3.msra.mxu1 %v640_v25 }
  0x44   :  { %953 = vmatmul.mubr.f32.gmra.mxu1 %v72_v52  ;;  %991 = vmatprep.subr.mxu1 %v1065_v17  ;;  %v636_v52 = vld [vmem:[%s1530_s3 + $0x18] sm:$0xff] }
  0x45   :  { %955 = vmatprep.mubr.f32.mxu1 %v73_v53  ;;  %992 = vmatpush3.msra.mxu1 %v639_v36 }
  0x46   :  { %905 = vmatmul.mubr.f32.gmra.mxu0 %v40_v54  ;;  %993 = vmatprep.subr.mxu1 %v1065_v17 }
  0x47   :  { %907 = vmatprep.mubr.f32.mxu0 %v41_v55  ;;  %994 = vmatpush3.msra.mxu1 %v638_v42  ;;  %v635_v55 = vld [vmem:[%s1530_s3 + $0x10] sm:$0xff] }
  0x48   :  { %956 = vmatmul.mubr.f32.gmra.mxu1 %v74_v56  ;;  %995 = vmatprep.subr.mxu1 %v1065_v17 }
  0x49   :  { %958 = vmatprep.mubr.f32.mxu1 %v75_v57  ;;  %996 = vmatpush3.msra.mxu1 %v637_v45  ;;  %v634_v57 = vld [vmem:[%s1530_s3 + $0x8] sm:$0xff] }
  0x4a   :  { %908 = vmatmul.mubr.f32.gmra.mxu0 %v42_v58  ;;  %997 = vmatprep.subr.mxu1 %v1065_v17 }
  0x4b   :  { %910 = vmatprep.mubr.f32.mxu0 %v43_v59  ;;  %998 = vmatpush3.msra.mxu1 %v636_v52 }
  0x4c   :  { %959 = vmatmul.mubr.f32.gmra.mxu1 %v76_v60  ;;  %999 = vmatprep.subr.mxu1 %v1065_v17 }
  0x4d   :  { %961 = vmatprep.mubr.f32.mxu1 %v77_v61  ;;  %1000 = vmatpush3.msra.mxu1 %v635_v55 }
  0x4e   :  { %911 = vmatmul.mubr.f32.gmra.mxu0 %v44_v62  ;;  %1001 = vmatprep.subr.mxu1 %v1065_v17 }
  0x4f   :  { %913 = vmatprep.mubr.f32.mxu0 %v45_v63  ;;  %1002 = vmatpush3.msra.mxu1 %v634_v57 }
  0x50   :  { %962 = vmatmul.mubr.f32.gmra.mxu1 %v78_v0  ;;  %v633_v0 = vld [vmem:[%s1530_s3] sm:$0xff]  ;;  %1003 = vmatprep.subr.mxu1 %v1065_v17 }
  0x51   :  { %964 = vmatprep.mubr.f32.mxu1 %v79_v1  ;;  %1004 = vmatpush3.msra.mxu1 %v633_v0 }
  0x52   :  { %914 = vmatmul.mubr.f32.gmra.mxu0 %v46_v2 }
  0x53   :  { %916 = vmatprep.mubr.f32.mxu0 %v47_v3 }
  0x54   :  { %965 = vmatmul.mubr.f32.gmra.mxu1 %v80_v4 }
  0x55   :  { %967 = vmatprep.mubr.f32.mxu1 %v81_v5 }
  0x56   :  { %917 = vmatmul.mubr.f32.gmra.mxu0 %v48_v6 }
  0x57   :  { %919 = vmatprep.mubr.f32.mxu0 %v49_v7 }
  0x58   :  { %968 = vmatmul.mubr.f32.gmra.mxu1 %v82_v8 }
  0x59   :  { %970 = vmatprep.mubr.f32.mxu1 %v83_v9 }
  0x5a   :  { %920 = vmatmul.mubr.f32.gmra.mxu0 %v50_v10 }
  0x5b   :  { %922 = vmatprep.mubr.f32.mxu0 %v51_v11 }
  0x5c   :  { %971 = vmatmul.mubr.f32.gmra.mxu1 %v84_v12 }
  0x5d   :  { %1005 = vmatprep.mubr.msk.f32.mxu1 %vm1066_vm0, %v1065_v17 }
  0x5e   :  { %923 = vmatmul.mubr.f32.gmra.mxu0 %v52_v13 }
  0x5f   :  { %925 = vmatprep.mubr.f32.mxu0 %v53_v14 }
  0x62   :  { %926 = vmatmul.mubr.f32.gmra.mxu0 %v54_v15 }
  0xe2   :  { %v879_v27 = vpop.f32.mrf.mxu0 }
  0xe3   :  { %v180_v28 = vadd.f32 %v879_v27, %v1377_v26 }
  0xe4   :  { %v174_v29 = vpop.f32.mrf.mxu0  ;;  %v1382_v32 = vpop.f32.mrf.mxu1 }
  0xe5   :  { %v175_v30 = vadd.f32 %v1377_v26, %v174_v29  ;;  %v494_v33 = vmax.f32 %v180_v28, 0.0 }
  0xe6   :  { %v882_v31 = vpop.f32.mrf.mxu0  ;;  %v1389_v41 = vpop.f32.mrf.mxu1 }
  0xe7   :  { %v493_v34 = vmax.f32 %v175_v30, 0.0  ;;  %v190_v38 = vadd.f32 %v882_v31, %v1377_v26 }
  0xe8   :  { %v184_v35 = vpop.f32.mrf.mxu0  ;;  %v1401_v51 = vpop.f32.mrf.mxu1 }
  0xe9   :  { %v557_v37 = vadd.f32 %v494_v33, %v493_v34  ;;  %v185_v39 = vadd.f32 %v1377_v26, %v184_v35  ;;  %v496_v46 = vmax.f32 %v190_v38, 0.0 }
  0xea   :  { %v885_v40 = vpop.f32.mrf.mxu0  ;;  %v1417_v63 = vpop.f32.mrf.mxu1 }
  0xeb   :  { %v495_v43 = vmax.f32 %v185_v39, 0.0  ;;  %v200_v48 = vadd.f32 %v885_v40, %v1377_v26 }
  0xec   :  { %v194_v44 = vpop.f32.mrf.mxu0  ;;  %v1426_v9 = vpop.f32.mrf.mxu1 }
  0xed   :  { %v558_v47 = vadd.f32 %v557_v37, %v495_v43  ;;  %v195_v49 = vadd.f32 %v1377_v26, %v194_v44  ;;  %v498_v58 = vmax.f32 %v200_v48, 0.0 }
  0xee   :  { %v888_v50 = vpop.f32.mrf.mxu0  ;;  %v1430_v18 = vpop.f32.mrf.mxu1 }
  0xef   :  { %v497_v53 = vmax.f32 %v195_v49, 0.0  ;;  %v559_v54 = vadd.f32 %v558_v47, %v496_v46  ;;  %v210_v60 = vadd.f32 %v888_v50, %v1377_v26 }
  0xf0   :  { %v204_v56 = vpop.f32.mrf.mxu0  ;;  %v1434_v28 = vpop.f32.mrf.mxu1 }
  0xf1   :  { %v560_v59 = vadd.f32 %v559_v54, %v497_v53  ;;  %v205_v61 = vadd.f32 %v1377_v26, %v204_v56  ;;  %v500_v4 = vmax.f32 %v210_v60, 0.0 }
  0xf2   :  { %v891_v62 = vpop.f32.mrf.mxu0  ;;  %v1438_v38 = vpop.f32.mrf.mxu1 }
  0xf3   :  { %v499_v1 = vmax.f32 %v205_v61, 0.0  ;;  %v561_v2 = vadd.f32 %v560_v59, %v498_v58  ;;  %v220_v6 = vadd.f32 %v891_v62, %v1377_v26 }
  0xf4   :  { %v214_v3 = vpop.f32.mrf.mxu0  ;;  %v1442_v48 = vpop.f32.mrf.mxu1 }
  0xf5   :  { %v562_v5 = vadd.f32 %v561_v2, %v499_v1  ;;  %v215_v7 = vadd.f32 %v1377_v26, %v214_v3  ;;  %v502_v13 = vmax.f32 %v220_v6, 0.0 }
  0xf6   :  { %v894_v8 = vpop.f32.mrf.mxu0  ;;  %v1446_v58 = vpop.f32.mrf.mxu1 }
  0xf7   :  { %v501_v10 = vmax.f32 %v215_v7, 0.0  ;;  %v563_v11 = vadd.f32 %v562_v5, %v500_v4  ;;  %v230_v15 = vadd.f32 %v894_v8, %v1377_v26 }
  0xf8   :  { %v224_v12 = vpop.f32.mrf.mxu0  ;;  %v1450_v4 = vpop.f32.mrf.mxu1 }
  0xf9   :  { %v564_v14 = vadd.f32 %v563_v11, %v501_v10  ;;  %v225_v16 = vadd.f32 %v1377_v26, %v224_v12  ;;  %v504_v22 = vmax.f32 %v230_v15, 0.0 }
  0xfa   :  { %v897_v17 = vpop.f32.mrf.mxu0 }
  0xfb   :  { %v503_v19 = vmax.f32 %v225_v16, 0.0  ;;  %v565_v20 = vadd.f32 %v564_v14, %v502_v13  ;;  %v240_v24 = vadd.f32 %v897_v17, %v1377_v26  ;;  %v1454_v14 = vpop.f32.mrf.mxu1 }
  0xfc   :  { %v234_v21 = vpop.f32.mrf.mxu0 }
  0xfd   :  { %v566_v23 = vadd.f32 %v565_v20, %v503_v19  ;;  %v235_v25 = vadd.f32 %v1377_v26, %v234_v21  ;;  %v506_v33 = vmax.f32 %v240_v24, 0.0  ;;  %v1458_v24 = vpop.f32.mrf.mxu1 }
  0xfe   :  { %v900_v27 = vpop.f32.mrf.mxu0 }
  0xff   :  { %v505_v29 = vmax.f32 %v235_v25, 0.0  ;;  %v567_v30 = vadd.f32 %v566_v23, %v504_v22  ;;  %v250_v35 = vadd.f32 %v900_v27, %v1377_v26 }
 0x100   :  { %v244_v31 = vpop.f32.mrf.mxu0 }
 0x101   :  { %v568_v34 = vadd.f32 %v567_v30, %v505_v29  ;;  %v245_v36 = vadd.f32 %v1377_v26, %v244_v31  ;;  %v508_v43 = vmax.f32 %v250_v35, 0.0 }
 0x102   :  { %v903_v37 = vpop.f32.mrf.mxu0 }
 0x103   :  { %v507_v39 = vmax.f32 %v245_v36, 0.0  ;;  %v569_v40 = vadd.f32 %v568_v34, %v506_v33  ;;  %v260_v45 = vadd.f32 %v903_v37, %v1377_v26  ;;  %v1462_v36 = vpop.f32.mrf.mxu1 }
 0x104   :  { %v254_v42 = vpop.f32.mrf.mxu0 }
 0x105   :  { %v570_v44 = vadd.f32 %v569_v40, %v507_v39  ;;  %v255_v46 = vadd.f32 %v1377_v26, %v254_v42  ;;  %v510_v53 = vmax.f32 %v260_v45, 0.0 }
 0x106   :  { %v906_v47 = vpop.f32.mrf.mxu0 }
 0x107   :  { %v509_v49 = vmax.f32 %v255_v46, 0.0  ;;  %v571_v50 = vadd.f32 %v570_v44, %v508_v43  ;;  %v270_v55 = vadd.f32 %v906_v47, %v1377_v26  ;;  %v1466_v47 = vpop.f32.mrf.mxu1 }
 0x108   :  { %v264_v52 = vpop.f32.mrf.mxu0 }
 0x109   :  { %v572_v54 = vadd.f32 %v571_v50, %v509_v49  ;;  %v265_v56 = vadd.f32 %v1377_v26, %v264_v52  ;;  %v512_v62 = vmax.f32 %v270_v55, 0.0 }
 0x10a   :  { %v909_v57 = vpop.f32.mrf.mxu0 }
 0x10b   :  { %v511_v59 = vmax.f32 %v265_v56, 0.0  ;;  %v573_v60 = vadd.f32 %v572_v54, %v510_v53  ;;  %v280_v1 = vadd.f32 %v909_v57, %v1377_v26 }
 0x10c   :  { %v274_v61 = vpop.f32.mrf.mxu0 }
 0x10d   :  { %v574_v0 = vadd.f32 %v573_v60, %v511_v59  ;;  %v275_v2 = vadd.f32 %v1377_v26, %v274_v61  ;;  %v514_v8 = vmax.f32 %v280_v1, 0.0  ;;  %v414_v59 = vpop.f32.mrf.mxu1 }
 0x10e   :  { %v912_v3 = vpop.f32.mrf.mxu0 }
 0x10f   :  { %v513_v5 = vmax.f32 %v275_v2, 0.0  ;;  %v575_v6 = vadd.f32 %v574_v0, %v512_v62  ;;  %v290_v11 = vadd.f32 %v912_v3, %v1377_v26 }
 0x110   :  { %v284_v7 = vpop.f32.mrf.mxu0 }
 0x111   :  { %v576_v10 = vadd.f32 %v575_v6, %v513_v5  ;;  %v285_v12 = vadd.f32 %v1377_v26, %v284_v7  ;;  %v516_v19 = vmax.f32 %v290_v11, 0.0  ;;  %v345_v5 = vadd.f32 %v1377_v26, %v1389_v41  ;;  %v954_v6 = vpop.f32.mrf.mxu1 }
 0x112   :  { %v915_v13 = vpop.f32.mrf.mxu0 }
 0x113   :  { %v515_v15 = vmax.f32 %v285_v12, 0.0  ;;  %v577_v16 = vadd.f32 %v576_v10, %v514_v8  ;;  %v300_v21 = vadd.f32 %v915_v13, %v1377_v26  ;;  %v350_v10 = vadd.f32 %v1382_v32, %v1377_v26 }
 0x114   :  { %v294_v17 = vpop.f32.mrf.mxu0  ;;  %v527_v13 = vmax.f32 %v345_v5, 0.0 }
 0x115   :  { %v578_v20 = vadd.f32 %v577_v16, %v515_v15  ;;  %v295_v22 = vadd.f32 %v1377_v26, %v294_v17  ;;  %v518_v30 = vmax.f32 %v300_v21, 0.0  ;;  %v355_v15 = vadd.f32 %v1377_v26, %v1417_v63  ;;  %v424_v16 = vpop.f32.mrf.mxu1 }
 0x116   :  { %v918_v23 = vpop.f32.mrf.mxu0  ;;  %v528_v17 = vmax.f32 %v350_v10, 0.0  ;;  %v375_v63 = vadd.f32 %v1377_v26, %v1438_v38  ;;  %v395_v38 = vadd.f32 %v1377_v26, %v1454_v14  ;;  %v415_v14 = vadd.f32 %v1377_v26, %v414_v59 }
 0x117   :  { %v517_v25 = vmax.f32 %v295_v22, 0.0  ;;  %v579_v27 = vadd.f32 %v578_v20, %v516_v19  ;;  %v310_v33 = vadd.f32 %v918_v23, %v1377_v26  ;;  %v360_v20 = vadd.f32 %v1401_v51, %v1377_v26  ;;  %v957_v23 = vpop.f32.mrf.mxu1 }
 0x118   :  { %v304_v29 = vpop.f32.mrf.mxu0  ;;  %v529_v41 = vmax.f32 %v355_v15, 0.0  ;;  %v365_v22 = vadd.f32 %v1377_v26, %v1430_v18  ;;  %v380_v51 = vadd.f32 %v1434_v28, %v1377_v26  ;;  %v385_v18 = vadd.f32 %v1377_v26, %v1446_v58 }
 0x119   :  { %v580_v31 = vadd.f32 %v579_v27, %v517_v25  ;;  %v305_v34 = vadd.f32 %v1377_v26, %v304_v29  ;;  %v520_v42 = vmax.f32 %v310_v33, 0.0  ;;  %v530_v25 = vmax.f32 %v360_v20, 0.0 }
 0x11a   :  { %v921_v35 = vpop.f32.mrf.mxu0  ;;  %v370_v27 = vadd.f32 %v1426_v9, %v1377_v26  ;;  %v531_v29 = vmax.f32 %v365_v22, 0.0  ;;  %v390_v9 = vadd.f32 %v1442_v48, %v1377_v26  ;;  %v400_v28 = vadd.f32 %v1450_v4, %v1377_v26 }
 0x11b   :  { %v519_v37 = vmax.f32 %v305_v34, 0.0  ;;  %v581_v39 = vadd.f32 %v580_v31, %v518_v30  ;;  %v320_v44 = vadd.f32 %v921_v35, %v1377_v26  ;;  %v434_v31 = vpop.f32.mrf.mxu1  ;;  %v533_v35 = vmax.f32 %v375_v63, 0.0 }
 0x11c   :  { %v314_v40 = vpop.f32.mrf.mxu0  ;;  %v532_v33 = vmax.f32 %v370_v27, 0.0  ;;  %v405_v58 = vadd.f32 %v1377_v26, %v1462_v36  ;;  %v410_v48 = vadd.f32 %v1458_v24, %v1377_v26  ;;  %v420_v4 = vadd.f32 %v1466_v47, %v1377_v26 }
 0x11d   :  { %v582_v43 = vadd.f32 %v581_v39, %v519_v37  ;;  %v315_v45 = vadd.f32 %v1377_v26, %v314_v40  ;;  %v522_v53 = vmax.f32 %v320_v44, 0.0  ;;  %v960_v39 = vpop.f32.mrf.mxu1  ;;  %v534_v40 = vmax.f32 %v380_v51, 0.0 }
 0x11e   :  { %v924_v46 = vpop.f32.mrf.mxu0  ;;  %v425_v36 = vadd.f32 %v1377_v26, %v424_v16  ;;  %v440_v15 = vadd.f32 %v957_v23, %v1377_v26 }
 0x11f   :  { %v521_v49 = vmax.f32 %v315_v45, 0.0  ;;  %v583_v50 = vadd.f32 %v582_v43, %v520_v42  ;;  %v330_v55 = vadd.f32 %v924_v46, %v1377_v26  ;;  %v535_v43 = vmax.f32 %v385_v18, 0.0  ;;  %v444_v45 = vpop.f32.mrf.mxu1 }
 0x120   :  { %v324_v52 = vpop.f32.mrf.mxu0  ;;  %v536_v46 = vmax.f32 %v390_v9, 0.0  ;;  %v543_v24 = vmax.f32 %v425_v36, 0.0  ;;  %v546_v16 = vmax.f32 %v440_v15, 0.0 }
 0x121   :  { %v584_v54 = vadd.f32 %v583_v50, %v521_v49  ;;  %v325_v56 = vadd.f32 %v1377_v26, %v324_v52  ;;  %v524_v1 = vmax.f32 %v330_v55, 0.0  ;;  %v537_v50 = vmax.f32 %v395_v38, 0.0 }
 0x122   :  { %v927_v57 = vpop.f32.mrf.mxu0 }
 0x123   :  { %v523_v60 = vmax.f32 %v325_v56, 0.0  ;;  %v585_v61 = vadd.f32 %v584_v54, %v522_v53  ;;  %v340_v62 = vadd.f32 %v927_v57, %v1377_v26  ;;  %v963_v53 = vpop.f32.mrf.mxu1  ;;  %v538_v54 = vmax.f32 %v400_v28, 0.0 }
 0x124   :  { %v334_v0 = vpop.f32.mrf.mxu0  ;;  %v539_v56 = vmax.f32 %v405_v58, 0.0 }
 0x125   :  { %v586_v2 = vadd.f32 %v585_v61, %v523_v60  ;;  %v335_v3 = vadd.f32 %v1377_v26, %v334_v0  ;;  %v526_v8 = vmax.f32 %v340_v62, 0.0  ;;  %v454_v60 = vpop.f32.mrf.mxu1  ;;  %v540_v61 = vmax.f32 %v410_v48, 0.0 }
 0x126   :  { %v541_v0 = vmax.f32 %v415_v14, 0.0 }
 0x127   :  { %v1474_v7 = vadd.f32 %v586_v2, %v524_v1  ;;  %v525_v11 = vmax.f32 %v335_v3, 0.0  ;;  %v966_v2 = vpop.f32.mrf.mxu1  ;;  %v542_v3 = vmax.f32 %v420_v4, 0.0 }
 0x129   :  { %v594_v12 = vadd.f32 %v526_v8, %v525_v11  ;;  %v430_v8 = vadd.f32 %v954_v6, %v1377_v26  ;;  %v435_v11 = vadd.f32 %v1377_v26, %v434_v31  ;;  %v464_v59 = vpop.f32.mrf.mxu1 }
 0x12a   :  { %v465_v31 = vadd.f32 %v1377_v26, %v464_v59 }
 0x12b   :  { %v595_v19 = vadd.f32 %v594_v12, %v527_v13  ;;  %v544_v12 = vmax.f32 %v430_v8, 0.0  ;;  %v969_v20 = vpop.f32.mrf.mxu1 }
 0x12d   :  { %v596_v21 = vadd.f32 %v595_v19, %v528_v17  ;;  %v545_v17 = vmax.f32 %v435_v11, 0.0  ;;  %v445_v19 = vadd.f32 %v1377_v26, %v444_v45 }
 0x12f   :  { %v597_v32 = vadd.f32 %v596_v21, %v529_v41  ;;  %v450_v21 = vadd.f32 %v960_v39, %v1377_v26  ;;  %v547_v22 = vmax.f32 %v445_v19, 0.0 }
 0x131   :  { %v598_v30 = vadd.f32 %v597_v32, %v530_v25  ;;  %v455_v25 = vadd.f32 %v1377_v26, %v454_v60  ;;  %v474_v32 = vpop.f32.mrf.mxu1  ;;  %v548_v27 = vmax.f32 %v450_v21, 0.0 }
 0x132   :  { %v475_v39 = vadd.f32 %v1377_v26, %v474_v32 }
 0x133   :  { %v599_v34 = vadd.f32 %v598_v30, %v531_v29  ;;  %v460_v30 = vadd.f32 %v963_v53, %v1377_v26  ;;  %v549_v63 = vmax.f32 %v455_v25, 0.0 }
 0x134   :  { %v553_v38 = vmax.f32 %v475_v39, 0.0 }
 0x135   :  { %v600_v37 = vadd.f32 %v599_v34, %v532_v33  ;;  %v972_v33 = vpop.f32.mrf.mxu1  ;;  %v550_v34 = vmax.f32 %v460_v30, 0.0 }
 0x137   :  { %v601_v42 = vadd.f32 %v600_v37, %v533_v35  ;;  %v470_v35 = vadd.f32 %v966_v2, %v1377_v26  ;;  %v551_v37 = vmax.f32 %v465_v31, 0.0 }
 0x139   :  { %v602_v44 = vadd.f32 %v601_v42, %v534_v40  ;;  %v484_v40 = vpop.f32.mrf.mxu1  ;;  %v588_v42 = vrot.slane %v1474_v7, 4  ;;  %v552_v9 = vmax.f32 %v470_v35, 0.0 }
 0x13b   :  { %v603_v49 = vadd.f32 %v602_v44, %v535_v43  ;;  %v480_v44 = vadd.f32 %v969_v20, %v1377_v26 }
 0x13d   :  { %v604_v52 = vadd.f32 %v603_v49, %v536_v46  ;;  %v485_v46 = vadd.f32 %v1377_v26, %v484_v40  ;;  %v589_v49 = vadd.f32 %v588_v42, %v1474_v7  ;;  %v554_v28 = vmax.f32 %v480_v44, 0.0 }
 0x13f   :  { %v605_v55 = vadd.f32 %v604_v52, %v537_v50  ;;  %v490_v52 = vadd.f32 %v972_v33, %v1377_v26  ;;  %v555_v58 = vmax.f32 %v485_v46, 0.0  ;;  %v747_v26 = vld [vmem:[%s1531_s4] ss:$0 sm:$0xff] }
 0x141   :  { %v606_v57 = vadd.f32 %v605_v55, %v538_v54  ;;  %v590_v54 = vrot.slane %v589_v49, 2  ;;  %v556_v55 = vmax.f32 %v490_v52, 0.0 }
 0x143   :  { %v607_v62 = vadd.f32 %v606_v57, %v539_v56  ;;  %v591_v57 = vadd.f32 %v590_v54, %v589_v49 }
 0x145   :  { %v608_v1 = vadd.f32 %v607_v62, %v540_v61  ;;  %v592_v61 = vrot.slane %v591_v57, 1 }
 0x147   :  { %v609_v5 = vadd.f32 %v608_v1, %v541_v0  ;;  %v593_v1 = vadd.f32 %v592_v61, %v591_v57 }
 0x149   :  { %v610_v10 = vadd.f32 %v609_v5, %v542_v3  ;;  %v631_v7 = vmul.f32 0.00390625, %v593_v1 }
 0x14b   :  { %v611_v13 = vadd.f32 %v610_v10, %v543_v24 }
 0x14d   :  { %v612_v47 = vadd.f32 %v611_v13, %v544_v12 }
 0x14f   :  { %v613_v41 = vadd.f32 %v612_v47, %v545_v17 }
 0x151   :  { %v614_v6 = vadd.f32 %v613_v41, %v546_v16 }
 0x153   :  { %v615_v29 = vadd.f32 %v614_v6, %v547_v22 }
 0x155   :  { %v616_v23 = vadd.f32 %v615_v29, %v548_v27 }
 0x157   :  { %v617_v51 = vadd.f32 %v616_v23, %v549_v63 }
 0x159   :  { %v618_v18 = vadd.f32 %v617_v51, %v550_v34 }
 0x15b   :  { %v619_v43 = vadd.f32 %v618_v18, %v551_v37 }
 0x15d   :  { %v620_v45 = vadd.f32 %v619_v43, %v552_v9 }
 0x15f   :  { %v621_v50 = vadd.f32 %v620_v45, %v553_v38 }
 0x161   :  { %v622_v53 = vadd.f32 %v621_v50, %v554_v28 }
 0x163   :  { %v623_v48 = vadd.f32 %v622_v53, %v555_v58 }
 0x165   :  { %v624_v56 = vadd.f32 %v623_v48, %v556_v55 }
 0x167   :  { %v625_v14 = vrot.slane %v624_v56, 4 }
 0x169   :  { %v626_v60 = vadd.f32 %v625_v14, %v624_v56 }
 0x16b   :  { %v627_v62 = vrot.slane %v626_v60, 2 }
 0x16d   :  { %v628_v4 = vadd.f32 %v627_v62, %v626_v60 }
 0x16f   :  { %v629_v0 = vrot.slane %v628_v4, 1 }
 0x171   :  { %v630_v36 = vadd.f32 %v629_v0, %v628_v4 }
 0x173   :  { %v632_v2 = vmul.f32 0.00390625, %v630_v36 }
 0x175   :  { %v659_v3 = vsel %vm658_vm1, %v632_v2, %v631_v7 }
 0x176   :  { %1006 = vmatmul.mubr.f32.vlgmr.msra.gmra.mxu1 %v659_v3 }
 0x236   :  { %v727_v5 = vpop.f32.mrf.mxu1 }
 0x237   :  { %v728_v8 = vadd.f32 %v747_v26, %v727_v5 }
 0x238   :  { %v1007_v24 = vpop.f32.mrf.mxu1 }
 0x239   :  { %731 = vst [vmem:[#allocation2] sm:$0x3] %v728_v8 }
 0x23a   :  { %1054 = shalt.err (!%p1051_p4)
}
 0x23b   :  { %741 = dma.vmem_to_hbm [thread:$0]  %s739_s30, 32, %s1532_s5, [#allocation3]  }
 0x23c   :  { %1063 = dma.done.wait [#allocation3], 32  }
 0x23d   :  { %1064 = vsyncadd [#allocation3], 4294967264 }
 0x23e   :  { %745 = vsyncpa [#allocation3], 1 }

</bundles_post_ra>
